<compile_context>
chip_gen: v7x
topology: tpu7x:2x2x1
jax: 0.10.0
libtpu: 0.0.40
codegen_flags: <defaults>
</compile_context>

<pallas_src>
import jax
import jax.numpy as jnp
from jax.experimental import pallas as pl
from jax.experimental.pallas import tpu as pltpu


# ---------------------------------------------------------------------------
# Kernel A: fused linear transform + attention projections (one MXU matmul).
# ---------------------------------------------------------------------------
def _make_transform_kernel(hc):
    def kernel(x_ref, w_ext_ref, xs_ref, alpha_ref):
        y = jnp.dot(x_ref[...], w_ext_ref[...], preferred_element_type=jnp.float32)
        xs_ref[...] = y[:, :hc].astype(jnp.bfloat16)    # [tile_src, heads*C]  (bf16)
        alpha_ref[...] = y[:, hc:]                      # [tile_src, 2*heads]  (f32)
    return kernel


# ---------------------------------------------------------------------------
# Kernel B: masked-softmax attention + aggregation over a tile of dst rows.
# ---------------------------------------------------------------------------
def _make_attention_kernel(heads, out_ch, concat, apply_elu, out_dim, out_dim_pad):
    def elu(o):
        # exp only on the clamped (non-positive) branch -> no overflow on dead lanes.
        return jnp.where(o > 0.0, o, jnp.exp(jnp.minimum(o, 0.0)) - 1.0)

    def kernel(a_dst_ref, a_src_ref, xs_ref, adj_ref, bias_ref, out_ref):
        # Additive edge mask, built ONCE per tile (int8 adj -> f32): {edge: 0, no-edge: -1e30}.
        mask_add = (adj_ref[...].astype(jnp.float32) - 1.0) * 1e30    # [tile, n_src]

        outs = []
        for h in range(heads):                                        # heads: small & static
            a_d = a_dst_ref[:, h:h + 1]                               # [tile, 1]
            a_s = a_src_ref[h:h + 1, :]                               # [1, n_src]
            logits = a_d + a_s                                        # rank-1 broadcast add
            logits = jnp.where(logits >= 0.0, logits, 0.2 * logits)   # LeakyReLU(0.2)
            logits = logits + mask_add                                # mask non-edges
            m = jnp.max(logits, axis=-1, keepdims=True)
            p = jnp.exp(logits - m)                                   # masked lanes underflow to 0
            denom = jnp.sum(p, axis=-1, keepdims=True)
            # Aggregate first (bf16 MXU operands, f32 accumulate), normalize after:
            num = jnp.dot(p.astype(jnp.bfloat16), xs_ref[h],
                          preferred_element_type=jnp.float32)         # [tile, C]
            # NOTE: approx reciprocal (EUP) deviates ~1e-4 rel. from exact division.
            outs.append(num * pl.reciprocal(denom + 1e-16, approx=True))

        if concat:
            o = jnp.concatenate(outs, axis=-1) + bias_ref[...]        # [tile, heads*C]
        else:
            acc = outs[0]
            for t in outs[1:]:
                acc = acc + t
            o = acc * (1.0 / float(heads)) + bias_ref[...]            # [tile, C]
        if apply_elu:
            o = elu(o)
        pad = out_dim_pad - out_dim
        if pad:
            o = jnp.concatenate(
                [o, jnp.zeros((o.shape[0], pad), jnp.float32)], axis=-1)
        out_ref[...] = o                                              # one lane-dense store
    return kernel


# ---------------------------------------------------------------------------
# Host-side helpers.
# ---------------------------------------------------------------------------
def _pick_src_tile(n_src, target=256, mult=8):
    """Largest multiple of `mult` <= target that divides n_src (else n_src)."""
    if n_src <= target or n_src % mult:
        return n_src
    t = max((min(target, n_src) // mult) * mult, mult)
    while t > mult and n_src % t:
        t -= mult
    return t if (n_src % t == 0) else n_src


def _pick_dst_tile(n_dst, target, mult=32):
    """Dst-row tile: multiple of `mult` (int8 adj sublane packing), divides n_dst,
    and leaves >= 2 grid steps when possible (keeps both v7x TensorCores busy)."""
    if n_dst % mult or n_dst < 2 * mult:
        return n_dst
    cap = min(target, n_dst // 2)
    t = max((cap // mult) * mult, mult)
    while t > mult and n_dst % t:
        t -= mult
    return t if n_dst % t == 0 else mult


def gat_conv_pallas(x_src, adj, w, att_src, att_dst, bias, *,
                    n_dst, heads, out_ch, concat, apply_elu,
                    tile_dst=256, tile_src=256):
    """One GATConv layer. x_dst is assumed to be x_src[:n_dst] (sampler invariant)."""
    n_src, f_in = x_src.shape
    hc = heads * out_ch
    out_dim = hc if concat else out_ch
    out_dim_pad = -(-out_dim // 128) * 128       # lane-dense output store
    assert n_dst <= n_src

    # ---- host: fold attention projections into W (W_ext = [W | W@Asrc | W@Adst]) ----
    w3 = w.reshape(f_in, heads, out_ch)
    w_ext = jnp.concatenate(
        [w,
         jnp.einsum("ihc,hc->ih", w3, att_src),
         jnp.einsum("ihc,hc->ih", w3, att_dst)], axis=1)   # [f_in, hc + 2*heads]

    # ---- Kernel A: x @ W_ext, gridded over src-row tiles ----
    ts = _pick_src_tile(n_src, tile_src)
    xs, alphas = pl.pallas_call(
        _make_transform_kernel(hc),
        out_shape=(jax.ShapeDtypeStruct((n_src, hc), jnp.bfloat16),
                   jax.ShapeDtypeStruct((n_src, 2 * heads), jnp.float32)),
        grid=(n_src // ts,),
        in_specs=[pl.BlockSpec((ts, f_in), lambda i: (i, 0)),             # x tile (streamed)
                  pl.BlockSpec((f_in, hc + 2 * heads), lambda i: (0, 0))],  # W_ext (resident)
        out_specs=(pl.BlockSpec((ts, hc), lambda i: (i, 0)),
                   pl.BlockSpec((ts, 2 * heads), lambda i: (i, 0))),
        compiler_params=pltpu.CompilerParams(dimension_semantics=("parallel",)),
    )(x_src, w_ext)

    # ---- layout plumbing in the wrapper (cheap XLA ops) ----
    xs3 = xs.reshape(n_src, heads, out_ch).transpose(1, 0, 2)   # [heads, n_src, C], bf16
    a_src_t = alphas[:, :heads].T                               # [heads, n_src]
    a_dst = alphas[:n_dst, heads:]                              # [n_dst, heads]
    adj = adj.astype(jnp.int8)                                  # exact 0/1 mask, 1 B / slot

    # ---- Kernel B: tiled masked-softmax attention + aggregation over dst rows ----
    td = _pick_dst_tile(n_dst, tile_dst)
    kernel = _make_attention_kernel(heads, out_ch, concat, apply_elu, out_dim, out_dim_pad)
    out = pl.pallas_call(
        kernel,
        out_shape=jax.ShapeDtypeStruct((n_dst, out_dim_pad), jnp.float32),
        grid=(n_dst // td,),
        in_specs=[
            pl.BlockSpec((td, heads), lambda i: (i, 0)),                 # alpha_dst (streamed)
            pl.BlockSpec((heads, n_src), lambda i: (0, 0)),              # alpha_src (resident)
            pl.BlockSpec((heads, n_src, out_ch), lambda i: (0, 0, 0)),   # xs (resident, bf16)
            pl.BlockSpec((td, n_src), lambda i: (i, 0)),                 # adj tile (streamed, int8)
            pl.BlockSpec((1, out_dim), lambda i: (0, 0)),                # bias (resident)
        ],
        out_specs=pl.BlockSpec((td, out_dim_pad), lambda i: (i, 0)),
        compiler_params=pltpu.CompilerParams(dimension_semantics=("parallel",)),
    )(a_dst, a_src_t, xs3, adj, bias)
    return out[:, :out_dim]


def init_gat_params(key, in_channels, hidden_channels, out_channels, num_layers, heads):
    """Deterministic glorot-uniform init matching GATConv parameter shapes."""
    def glorot(k, shape, fan_in, fan_out):
        lim = (6.0 / (fan_in + fan_out)) ** 0.5
        return jax.random.uniform(k, shape, jnp.float32, -lim, lim)

    layer_dims = [(in_channels, hidden_channels, True)]
    for _ in range(num_layers - 2):
        layer_dims.append((heads * hidden_channels, hidden_channels, True))
    layer_dims.append((heads * hidden_channels, out_channels, False))

    params = []
    for (f_in, f_out, concat) in layer_dims:
        key, k1, k2, k3 = jax.random.split(key, 4)
        w = glorot(k1, (f_in, heads * f_out), f_in, heads * f_out)
        att_src = glorot(k2, (heads, f_out), f_out, 1)
        att_dst = glorot(k3, (heads, f_out), f_out, 1)
        bias_dim = heads * f_out if concat else f_out
        bias = jnp.zeros((1, bias_dim), jnp.float32)   # PyG zeros the bias on reset
        params.append(dict(w=w, att_src=att_src, att_dst=att_dst, bias=bias,
                           out_ch=f_out, concat=concat))
    return params


def gat_forward(x, adjs, params, num_layers, *, tile_dst=256, tile_src=256):
    """adjs: list of (adj_dense[n_dst, n_src], (n_src, n_dst)) per layer.

    Relies on the sampler invariant x_target = x[:n_dst] (dst nodes are a prefix of
    src nodes), exactly as in the reference GAT.forward.
    """
    for i, (adj, size) in enumerate(adjs):
        assert x.shape[0] == size[0]
        p = params[i]
        last = (i == num_layers - 1)
        x = gat_conv_pallas(
            x, adj,
            p["w"], p["att_src"], p["att_dst"], p["bias"],
            n_dst=size[1], heads=p["att_src"].shape[0], out_ch=p["out_ch"],
            concat=p["concat"], apply_elu=not last,
            tile_dst=tile_dst, tile_src=tile_src)
        # F.dropout(p=0.5, training=False) -> identity (eval mode)
    return x


def build_dense_adj(key, n_src, n_dst, k_neighbors):
    """Random k-regular bipartite sampling + self loops, densified to [n_dst, n_src] int8."""
    nbrs = jax.random.randint(key, (n_dst, k_neighbors), 0, n_src)
    dst = jnp.repeat(jnp.arange(n_dst), k_neighbors)
    src = nbrs.reshape(-1)
    adj = jnp.zeros((n_dst, n_src), jnp.int8).at[dst, src].set(1)
    diag = jnp.arange(n_dst)
    adj = adj.at[diag, diag].set(1)     # add_self_loops (dst d == src d: prefix ordering)
    return adj                          # exact 0/1 mask, 1 byte per slot


if __name__ == "__main__":
    # Small config: GAT(in=16, hidden=16, out=8, num_layers=2, heads=2)
    in_channels, hidden_channels, out_channels = 16, 16, 8
    num_layers, heads = 2, 2

    # NeighborSampler-style bipartite sizes: 128 -> 64 -> 32 nodes.
    sizes = [(128, 64), (64, 32)]

    key = jax.random.PRNGKey(0)
    key, kx, ka0, ka1, kp = jax.random.split(key, 5)

    x = jax.random.normal(kx, (sizes[0][0], in_channels), jnp.float32)
    adjs = [
        (build_dense_adj(ka0, sizes[0][0], sizes[0][1], 4), sizes[0]),
        (build_dense_adj(ka1, sizes[1][0], sizes[1][1], 4), sizes[1]),
    ]
    params = init_gat_params(kp, in_channels, hidden_channels, out_channels,
                             num_layers, heads)

    # tile_dst=32 exercises the multi-step pipelined/parallel grid even at toy sizes.
    out = gat_forward(x, adjs, params, num_layers, tile_dst=32)
    out = jax.block_until_ready(out)
    assert out.shape == (sizes[-1][1], out_channels), out.shape
    assert jnp.all(jnp.isfinite(out))
    print("KERNEL_OK")
</pallas_src>

<mosaic_0001>
module attributes {stable_mosaic.version = 11 : i64} {
  func.func @kernel(%arg0: i32, %arg1: memref<128x16xf32, #tpu.memory_space<vmem>>, %arg2: memref<16x36xf32, #tpu.memory_space<vmem>>, %arg3: memref<128x32xbf16, #tpu.memory_space<vmem>>, %arg4: memref<128x4xf32, #tpu.memory_space<vmem>>) attributes {dimension_semantics = [#tpu.dimension_semantics<parallel>], iteration_bounds = array<i64: 1>, scalar_prefetch = 0 : i64, scratch_operands = 0 : i64, tpu.core_type = #tpu.core_type<tc>, window_params = [{transform_indices = @transform_0, window_bounds = array<i64: 128, 16>}, {pipeline_mode = #tpu.pipeline_mode<synchronous>, transform_indices = @transform_1, window_bounds = array<i64: 16, 36>}, {transform_indices = @transform_2, window_bounds = array<i64: 128, 32>}, {transform_indices = @transform_3, window_bounds = array<i64: 128, 4>}]} {
    %c0 = arith.constant 0 : index
    %c0_0 = arith.constant 0 : index
    %0 = vector.load %arg1[%c0, %c0_0] : memref<128x16xf32, #tpu.memory_space<vmem>>, vector<128x16xf32>
    %c0_1 = arith.constant 0 : index
    %c0_2 = arith.constant 0 : index
    %1 = vector.load %arg2[%c0_1, %c0_2] : memref<16x36xf32, #tpu.memory_space<vmem>>, vector<16x36xf32>
    %cst = arith.constant dense<0.000000e+00> : vector<128x36xf32>
    %2 = tpu.matmul %0, %1, %cst {dimension_numbers = #tpu.dot_dimension_numbers<[1], [0], [0], [1], [0, 0, 1, 1], [], []>} : vector<128x16xf32>, vector<16x36xf32>, vector<128x36xf32> -> vector<128x36xf32>
    %3 = vector.extract_strided_slice %2 {offsets = [0, 0], sizes = [128, 32], strides = [1, 1]} : vector<128x36xf32> to vector<128x32xf32>
    %4 = arith.truncf %3 : vector<128x32xf32> to vector<128x32xbf16>
    %c0_3 = arith.constant 0 : index
    %c0_4 = arith.constant 0 : index
    %5 = vector.load %arg3[%c0_3, %c0_4] : memref<128x32xbf16, #tpu.memory_space<vmem>>, vector<128x32xbf16>
    tpu.vector_store %arg3[%c0_3, %c0_4], %4 {strides = array<i32>} : memref<128x32xbf16, #tpu.memory_space<vmem>>, vector<128x32xbf16>,
    %6 = vector.extract_strided_slice %2 {offsets = [0, 32], sizes = [128, 4], strides = [1, 1]} : vector<128x36xf32> to vector<128x4xf32>
    %c0_5 = arith.constant 0 : index
    %c0_6 = arith.constant 0 : index
    %7 = vector.load %arg4[%c0_5, %c0_6] : memref<128x4xf32, #tpu.memory_space<vmem>>, vector<128x4xf32>
    tpu.vector_store %arg4[%c0_5, %c0_6], %6 {strides = array<i32>} : memref<128x4xf32, #tpu.memory_space<vmem>>, vector<128x4xf32>,
    return
  }
  func.func @transform_0(%arg0: i32) -> (i32, i32) {
    %c0_i32 = arith.constant 0 : i32
    %c0_i32_0 = arith.constant 0 : i32
    return %arg0, %c0_i32 : i32, i32
  }
  func.func @transform_1(%arg0: i32) -> (i32, i32) {
    %c0_i32 = arith.constant 0 : i32
    %c0_i32_0 = arith.constant 0 : i32
    %c0_i32_1 = arith.constant 0 : i32
    return %c0_i32, %c0_i32_0 : i32, i32
  }
  func.func @transform_2(%arg0: i32) -> (i32, i32) {
    %c0_i32 = arith.constant 0 : i32
    %c0_i32_0 = arith.constant 0 : i32
    return %arg0, %c0_i32 : i32, i32
  }
  func.func @transform_3(%arg0: i32) -> (i32, i32) {
    %c0_i32 = arith.constant 0 : i32
    %c0_i32_0 = arith.constant 0 : i32
    return %arg0, %c0_i32 : i32, i32
  }
}

</mosaic_0001>

<bundles_post_ra>
// kernel: tpu_custom_call.1
= control target key start
LH: loop header
LB: loop body
LE: loop exit
PB: predicated region body
PF: predicated region fallthrough
CT: control target
= control target key end

     0   :  { %vm31_vm0 = vcmask 130048   ;;  %vm289_vm1 = vcmask 257024   ;;  %s496_s20 = smov 96   ;;  %vm370_vm2 = vcmask 31744   ;;  %s731_s1 = inlined_call_operand.vmem [shape: f32[16,36], index: 1, kind: input, shape index: {}]   ;;  %s732_s0 = inlined_call_operand.vmem [shape: f32[128,16], index: 0, kind: input, shape index: {}]   ;;  %s733_s2 = inlined_call_operand.vmem [shape: bf16[128,32], index: 2, kind: output, shape index: {0}]   ;;  %s734_s3 = inlined_call_operand.vmem [shape: f32[128,4], index: 3, kind: output, shape index: {1}]  }
   0x1   :  { %v29_v0 = vld [vmem:[%s731_s1] sm:$0xff]  ;;  %v30_v1 = vld [vmem:[%s731_s1 + $0x8] sm:$0xff]  ;;  %v15_v7 = vld [vmem:[%s732_s0 + $0x10] sm:$0xff] }
   0x2   :  { %v13_v2 = vld [vmem:[%s732_s0] sm:$0xff]  ;;  %v489_v3 = vpack.c.bf16 %v30_v1, %v29_v0  ;;  %v14_v5 = vld [vmem:[%s732_s0 + $0x8] sm:$0xff]  ;;  %v23_v8 = vld [vmem:[%s732_s0 + $0x50] sm:$0xff] }
   0x3   :  { %465 = vmatprep.mubr.msk.f32.mxu0 %vm31_vm0, %v13_v2  ;;  %v21_v4 = vld [vmem:[%s732_s0 + $0x40] sm:$0xff]  ;;  %v22_v6 = vld [vmem:[%s732_s0 + $0x48] sm:$0xff]  ;;  %v16_v9 = vld [vmem:[%s732_s0 + $0x18] sm:$0xff] }
   0x4   :  { %477 = vmatprep.mubr.msk.f32.mxu1 %vm31_vm0, %v21_v4  ;;  %490 = vmatprep.subr.bf16.mxu0 %v489_v3  ;;  %v24_v10 = vld [vmem:[%s732_s0 + $0x58] sm:$0xff]  ;;  %v17_v11 = vld [vmem:[%s732_s0 + $0x20] sm:$0xff]  ;;  %v18_v13 = vld [vmem:[%s732_s0 + $0x28] sm:$0xff] }
   0x5   :  { %493 = vmatprep.subr.bf16.mxu1 %v489_v3  ;;  %492 = vmatpush3.bf16.msra.mxu0 %v489_v3  ;;  %v25_v12 = vld [vmem:[%s732_s0 + $0x60] sm:$0xff]  ;;  %v26_v14 = vld [vmem:[%s732_s0 + $0x68] sm:$0xff]  ;;  %v19_v15 = vld [vmem:[%s732_s0 + $0x30] sm:$0xff] }
   0x6   :  { %494 = vmatpush3.bf16.msra.mxu1 %v489_v3  ;;  %v27_v16 = vld [vmem:[%s732_s0 + $0x70] sm:$0xff]  ;;  %v20_v17 = vld [vmem:[%s732_s0 + $0x38] sm:$0xff] }
   0x7   :  { %v28_v18 = vld [vmem:[%s732_s0 + $0x78] sm:$0xff] }
   0x8   :  { %466 = vmatmul.mubr.msk.f32.vlgmr.msra.gmra.mrb[0].mxu0 %vm31_vm0, %v14_v5 }
   0x9   :  { %478 = vmatmul.mubr.msk.f32.vlgmr.msra.gmra.mrb[0].mxu1 %vm31_vm0, %v22_v6  ;;  %468 = vmatprep.mubr.msk.f32.mxu0 %vm31_vm0, %v15_v7 }
   0xa   :  { %480 = vmatprep.mubr.msk.f32.mxu1 %vm31_vm0, %v23_v8 }
   0xc   :  { %469 = vmatmul.mubr.msk.f32.gmra.mrb[2].mxu0 %vm31_vm0, %v16_v9 }
   0xd   :  { %481 = vmatmul.mubr.msk.f32.gmra.mrb[2].mxu1 %vm31_vm0, %v24_v10  ;;  %471 = vmatprep.mubr.msk.f32.mxu0 %vm31_vm0, %v17_v11 }
   0xe   :  { %483 = vmatprep.mubr.msk.f32.mxu1 %vm31_vm0, %v25_v12 }
  0x10   :  { %472 = vmatmul.mubr.msk.f32.gmra.mrb[4].mxu0 %vm31_vm0, %v18_v13 }
  0x11   :  { %484 = vmatmul.mubr.msk.f32.gmra.mrb[4].mxu1 %vm31_vm0, %v26_v14  ;;  %474 = vmatprep.mubr.msk.f32.mxu0 %vm31_vm0, %v19_v15 }
  0x12   :  { %486 = vmatprep.mubr.msk.f32.mxu1 %vm31_vm0, %v27_v16 }
  0x14   :  { %475 = vmatmul.mubr.msk.f32.gmra.mrb[6].mxu0 %vm31_vm0, %v20_v17 }
  0x15   :  { %487 = vmatmul.mubr.msk.f32.gmra.mrb[6].mxu1 %vm31_vm0, %v28_v18 }
  0xdb   :  { %v467_v19 = vpop.f32.mrb[0].mxu0 }
  0xdc   :  { %v479_v20 = vpop.f32.mrb[0].mxu1  ;;  %v428_v21 = vpack.c.bf16 %v467_v19, %v467_v19  ;;  %324 = vrot.lane.b32.xlu0 %v467_v19, %s496_s20  ;;  %v146_v24 = vpop.f32.mrb[1].mxu0 }
  0xdd   :  { %v436_v22 = vpack.c.bf16 %v479_v20, %v479_v20  ;;  %340 = vrot.lane.b32.xlu1 %v479_v20, %s496_s20  ;;  %v186_v23 = vpop.f32.mrb[1].mxu1  ;;  %v427_v26 = vpack.c.bf16 %v146_v24, %v146_v24 }
  0xde   :  { %v435_v25 = vpack.c.bf16 %v186_v23, %v186_v23  ;;  %291 = vst.msk [vmem:[%s733_s2 + $0x4] sm:$0xf] %vm289_vm1, %v428_v21 }
  0xdf   :  { %299 = vst.msk [vmem:[%s733_s2 + $0x24] sm:$0xf] %vm289_vm1, %v436_v22  ;;  %290 = vst.msk [vmem:[%s733_s2] sm:$0xf] %vm289_vm1, %v427_v26  ;;  %v470_v27 = vpop.f32.mrb[2].mxu0 }
  0xe0   :  { %298 = vst.msk [vmem:[%s733_s2 + $0x20] sm:$0xf] %vm289_vm1, %v435_v25  ;;  %v482_v28 = vpop.f32.mrb[2].mxu1  ;;  %v430_v29 = vpack.c.bf16 %v470_v27, %v470_v27  ;;  %322 = vrot.lane.b32.xlu0 %v146_v24, %s496_s20  ;;  %v156_v30 = vpop.f32.mrb[3].mxu0 }
  0xe1   :  { %328 = vrot.lane.b32.xlu1 %v470_v27, %s496_s20  ;;  %v438_v31 = vpack.c.bf16 %v482_v28, %v482_v28  ;;  %v196_v32 = vpop.f32.mrb[3].mxu1  ;;  %v429_v33 = vpack.c.bf16 %v156_v30, %v156_v30 }
  0xe2   :  { %v437_v34 = vpack.c.bf16 %v196_v32, %v196_v32  ;;  %293 = vst.msk [vmem:[%s733_s2 + $0xc] sm:$0xf] %vm289_vm1, %v430_v29 }
  0xe3   :  { %301 = vst.msk [vmem:[%s733_s2 + $0x2c] sm:$0xf] %vm289_vm1, %v438_v31  ;;  %292 = vst.msk [vmem:[%s733_s2 + $0x8] sm:$0xf] %vm289_vm1, %v429_v33  ;;  %v473_v35 = vpop.f32.mrb[4].mxu0 }
  0xe4   :  { %300 = vst.msk [vmem:[%s733_s2 + $0x28] sm:$0xf] %vm289_vm1, %v437_v34  ;;  %v485_v36 = vpop.f32.mrb[4].mxu1  ;;  %338 = vrot.lane.b32.xlu0 %v186_v23, %s496_s20  ;;  %v432_v37 = vpack.c.bf16 %v473_v35, %v473_v35  ;;  %v166_v38 = vpop.f32.mrb[5].mxu0 }
  0xe5   :  { %344 = vrot.lane.b32.xlu1 %v482_v28, %s496_s20  ;;  %v440_v39 = vpack.c.bf16 %v485_v36, %v485_v36  ;;  %v206_v40 = vpop.f32.mrb[5].mxu1  ;;  %v431_v41 = vpack.c.bf16 %v166_v38, %v166_v38 }
  0xe6   :  { %v439_v42 = vpack.c.bf16 %v206_v40, %v206_v40  ;;  %295 = vst.msk [vmem:[%s733_s2 + $0x14] sm:$0xf] %vm289_vm1, %v432_v37 }
  0xe7   :  { %303 = vst.msk [vmem:[%s733_s2 + $0x34] sm:$0xf] %vm289_vm1, %v440_v39  ;;  %294 = vst.msk [vmem:[%s733_s2 + $0x10] sm:$0xf] %vm289_vm1, %v431_v41  ;;  %v476_v43 = vpop.f32.mrb[6].mxu0 }
  0xe8   :  { %302 = vst.msk [vmem:[%s733_s2 + $0x30] sm:$0xf] %vm289_vm1, %v439_v42  ;;  %v488_v44 = vpop.f32.mrb[6].mxu1  ;;  %342 = vrot.lane.b32.xlu0 %v196_v32, %s496_s20  ;;  %v434_v45 = vpack.c.bf16 %v476_v43, %v476_v43  ;;  %v176_v46 = vpop.f32.mrb[7].mxu0 }
  0xe9   :  { %326 = vrot.lane.b32.xlu1 %v156_v30, %s496_s20  ;;  %v442_v47 = vpack.c.bf16 %v488_v44, %v488_v44  ;;  %v216_v48 = vpop.f32.mrb[7].mxu1  ;;  %v433_v49 = vpack.c.bf16 %v176_v46, %v176_v46 }
  0xea   :  { %v441_v50 = vpack.c.bf16 %v216_v48, %v216_v48  ;;  %297 = vst.msk [vmem:[%s733_s2 + $0x1c] sm:$0xf] %vm289_vm1, %v434_v45 }
  0xeb   :  { %305 = vst.msk [vmem:[%s733_s2 + $0x3c] sm:$0xf] %vm289_vm1, %v442_v47  ;;  %296 = vst.msk [vmem:[%s733_s2 + $0x18] sm:$0xf] %vm289_vm1, %v433_v49 }
  0xec   :  { %304 = vst.msk [vmem:[%s733_s2 + $0x38] sm:$0xf] %vm289_vm1, %v441_v50  ;;  %330 = vrot.lane.b32.xlu0 %v166_v38, %s496_s20 }
  0xed   :  { %332 = vrot.lane.b32.xlu1 %v473_v35, %s496_s20 }
  0xf0   :  { %346 = vrot.lane.b32.xlu0 %v206_v40, %s496_s20 }
  0xf1   :  { %348 = vrot.lane.b32.xlu1 %v485_v36, %s496_s20 }
  0xf4   :  { %334 = vrot.lane.b32.xlu0 %v176_v46, %s496_s20 }
  0xf5   :  { %336 = vrot.lane.b32.xlu1 %v476_v43, %s496_s20 }
  0xf8   :  { %350 = vrot.lane.b32.xlu0 %v216_v48, %s496_s20 }
  0xf9   :  { %352 = vrot.lane.b32.xlu1 %v488_v44, %s496_s20 }
 0x14e   :  { %v325_v52 = vpop.permute.xlu0 %324 }
 0x14f   :  { %v341_v51 = vpop.permute.xlu1 %340  ;;  %372 = vst.msk [vmem:[%s734_s3 + $0x8] sm:$0xff] %vm370_vm2, %v325_v52 }
 0x150   :  { %380 = vst.msk [vmem:[%s734_s3 + $0x48] sm:$0xff] %vm370_vm2, %v341_v51 }
 0x152   :  { %v323_v53 = vpop.permute.xlu0 %322 }
 0x153   :  { %v329_v54 = vpop.permute.xlu1 %328  ;;  %371 = vst.msk [vmem:[%s734_s3] sm:$0xff] %vm370_vm2, %v323_v53 }
 0x154   :  { %374 = vst.msk [vmem:[%s734_s3 + $0x18] sm:$0xff] %vm370_vm2, %v329_v54 }
 0x156   :  { %v339_v55 = vpop.permute.xlu0 %338 }
 0x157   :  { %v345_v56 = vpop.permute.xlu1 %344  ;;  %379 = vst.msk [vmem:[%s734_s3 + $0x40] sm:$0xff] %vm370_vm2, %v339_v55 }
 0x158   :  { %382 = vst.msk [vmem:[%s734_s3 + $0x58] sm:$0xff] %vm370_vm2, %v345_v56 }
 0x15a   :  { %v343_v57 = vpop.permute.xlu0 %342 }
 0x15b   :  { %v327_v58 = vpop.permute.xlu1 %326  ;;  %381 = vst.msk [vmem:[%s734_s3 + $0x50] sm:$0xff] %vm370_vm2, %v343_v57 }
 0x15c   :  { %373 = vst.msk [vmem:[%s734_s3 + $0x10] sm:$0xff] %vm370_vm2, %v327_v58 }
 0x15e   :  { %v331_v60 = vpop.permute.xlu0 %330 }
 0x15f   :  { %v333_v59 = vpop.permute.xlu1 %332  ;;  %375 = vst.msk [vmem:[%s734_s3 + $0x20] sm:$0xff] %vm370_vm2, %v331_v60 }
 0x160   :  { %376 = vst.msk [vmem:[%s734_s3 + $0x28] sm:$0xff] %vm370_vm2, %v333_v59 }
 0x162   :  { %v347_v62 = vpop.permute.xlu0 %346 }
 0x163   :  { %v349_v61 = vpop.permute.xlu1 %348  ;;  %383 = vst.msk [vmem:[%s734_s3 + $0x60] sm:$0xff] %vm370_vm2, %v347_v62 }
 0x164   :  { %384 = vst.msk [vmem:[%s734_s3 + $0x68] sm:$0xff] %vm370_vm2, %v349_v61 }
 0x166   :  { %v335_v0 = vpop.permute.xlu0 %334 }
 0x167   :  { %v337_v63 = vpop.permute.xlu1 %336  ;;  %377 = vst.msk [vmem:[%s734_s3 + $0x30] sm:$0xff] %vm370_vm2, %v335_v0 }
 0x168   :  { %378 = vst.msk [vmem:[%s734_s3 + $0x38] sm:$0xff] %vm370_vm2, %v337_v63 }
 0x16a   :  { %v351_v2 = vpop.permute.xlu0 %350 }
 0x16b   :  { %v353_v1 = vpop.permute.xlu1 %352  ;;  %385 = vst.msk [vmem:[%s734_s3 + $0x70] sm:$0xff] %vm370_vm2, %v351_v2 }
 0x16c   :  { %386 = vst.msk [vmem:[%s734_s3 + $0x78] sm:$0xff] %vm370_vm2, %v353_v1 }

</bundles_post_ra>
